<compile_context>
chip_gen: v7x
topology: tpu7x:2x2x1
jax: 0.10.0
libtpu: 0.0.40
codegen_flags: <defaults>
</compile_context>

<pallas_src>
import jax
import jax.numpy as jnp
from jax.experimental import pallas as pl
from jax.experimental.pallas import tpu as pltpu

_LANES = 128      # vreg lane width
_SUBLANES = 8     # vreg sublane depth (f32)
# 4096 x 128 f32 = 2 MiB per tile; 2 pipeline buffers = 4 MiB — safely under
# the scoped-VMEM limits of v5e/v6e (128 MiB phys) and v7x (64 MiB phys).
_MAX_TILE_ROWS = 4096


def _round_up(x, m):
    return ((x + m - 1) // m) * m


# ---------------------------------------------------------------------------
# __init__-time reduction: mean over the training targets.
# ---------------------------------------------------------------------------
def compute_mean(y_train, *, max_tile_rows=_MAX_TILE_ROWS):
    """y_train: (N,) array (any float dtype) -> 0-d f32 mean."""
    y = y_train.reshape(-1)
    n = y.shape[0]
    inv_n = 1.0 / float(n)  # divide by the TRUE n, not the padded length

    # Lane/sublane-dense 2-D layout: (rows, 128), rows a multiple of the tile.
    rows = _round_up(pl.cdiv(n, _LANES), _SUBLANES)
    tile_rows = min(max_tile_rows, rows)
    rows = _round_up(rows, tile_rows)
    n_pad = rows * _LANES
    if n_pad != n:
        y = jnp.pad(y, (0, n_pad - n))  # zero tail contributes nothing to the sum
    y2 = y.reshape(rows, _LANES)        # keep the input's native dtype

    grid = (rows // tile_rows,)

    def kernel(y_ref, o_ref, acc_ref):
        i = pl.program_id(0)

        @pl.when(i == 0)
        def _init():
            acc_ref[...] = jnp.zeros_like(acc_ref)

        # Cast narrow dtypes to f32 inside the kernel (free filler under the
        # load slot), then do a VPU-only partial reduce (tile_rows,128)->(8,128)
        # that keeps lanes and sublanes fully dense — no XLU work per step.
        x = y_ref[...].astype(jnp.float32)
        acc_ref[...] += x.reshape(-1, _SUBLANES, _LANES).sum(axis=0)

        @pl.when(i == pl.num_programs(0) - 1)
        def _finalize():
            # Single cross-lane/cross-sublane reduce + scale, one store total.
            o_ref[...] = (jnp.sum(acc_ref[...]) * inv_n).reshape(1, 1)

    out = pl.pallas_call(
        kernel,
        out_shape=jax.ShapeDtypeStruct((1, 1), jnp.float32),
        grid_spec=pltpu.PrefetchScalarGridSpec(
            num_scalar_prefetch=0,
            grid=grid,
            in_specs=[pl.BlockSpec((tile_rows, _LANES), lambda i: (i, 0))],
            out_specs=pl.BlockSpec((1, 1), lambda i: (0, 0)),
            scratch_shapes=[pltpu.VMEM((_SUBLANES, _LANES), jnp.float32)],
        ),
        compiler_params=pltpu.CompilerParams(
            dimension_semantics=("arbitrary",),      # reduction axis
            vmem_limit_bytes=32 * 1024 * 1024,       # explicit, safe on v5e/v6e/v7x
        ),
    )(y2)
    return out.reshape(())


# ---------------------------------------------------------------------------
# forward(datum): return the stored constant; input is ignored, exactly like
# the PyTorch module.  No pallas_call — a kernel launch here would be pure
# overhead for a 4-byte constant (per perf review).
# ---------------------------------------------------------------------------
def mean_predictor_forward(mean_scalar, datum=None):
    del datum  # forward() ignores its input
    # matches torch.tensor([self.mean]).squeeze(): 0-d float32
    return jnp.asarray(mean_scalar, dtype=jnp.float32).reshape(())


if __name__ == "__main__":
    key = jax.random.PRNGKey(0)
    k_y, k_w, k_b, k_x, k_y2 = jax.random.split(key, 5)

    # Synthetic "data.train" targets: 64 scalar y values.
    y_train = jax.random.normal(k_y, (64,), dtype=jnp.float32)

    # _throwaway_param = nn.Linear(1, 1): deterministically initialized, never
    # used in the forward pass (kept only to mirror the module's __init__).
    throwaway_w = jax.random.normal(k_w, (1, 1), dtype=jnp.float32)
    throwaway_b = jax.random.normal(k_b, (1,), dtype=jnp.float32)

    # __init__: compute the mean with the tiled Pallas reduction kernel.
    mean = compute_mean(y_train)
    mean = jax.block_until_ready(mean)
    print("we gonna predict {}".format(float(mean)))

    # forward(datum): datum is arbitrary and ignored (small dummy input).
    datum = jax.random.normal(k_x, (2, 4, 16, 16), dtype=jnp.float32)
    pred = mean_predictor_forward(mean, datum)
    pred = jax.block_until_ready(pred)

    # Correctness check against plain JAX reference (small case).
    ref = jnp.mean(y_train)
    assert pred.shape == ()            # 0-d, like torch .squeeze()
    assert pred.dtype == jnp.float32
    assert jnp.allclose(pred, ref, rtol=1e-6, atol=1e-6)

    # Second check: exercise the multi-step grid + padded-tail path
    # (N=5000 is not a multiple of 8*128; tiny tile forces several grid steps).
    y_big = jax.random.normal(k_y2, (5000,), dtype=jnp.float32)
    mean_big = jax.block_until_ready(compute_mean(y_big, max_tile_rows=8))
    assert jnp.allclose(mean_big, jnp.mean(y_big), rtol=1e-5, atol=1e-6)

    print("KERNEL_OK")
</pallas_src>

<mosaic_0001>
module attributes {stable_mosaic.version = 11 : i64} {
  func.func @kernel(%arg0: i32, %arg1: memref<8x128xf32, #tpu.memory_space<vmem>>, %arg2: memref<1x1xf32, #tpu.memory_space<vmem>>, %arg3: memref<8x128xf32, #tpu.memory_space<vmem>>) attributes {dimension_semantics = [#tpu.dimension_semantics<arbitrary>], iteration_bounds = array<i64: 1>, scalar_prefetch = 0 : i64, scratch_operands = 1 : i64, tpu.core_type = #tpu.core_type<tc>, window_params = [{transform_indices = @transform_0, window_bounds = array<i64: 8, 128>}, {pipeline_mode = #tpu.pipeline_mode<synchronous>, transform_indices = @transform_1, window_bounds = array<i64: 1, 1>}]} {
    %c0_i32 = arith.constant 0 : i32
    %0 = arith.cmpi eq, %arg0, %c0_i32 : i32
    %1 = arith.extui %0 : i1 to i32
    %c0_i32_0 = arith.constant 0 : i32
    %2 = arith.cmpi ne, %1, %c0_i32_0 : i32
    scf.if %2 {
      %cst_8 = arith.constant 0.000000e+00 : f32
      %12 = vector.broadcast %cst_8 : f32 to vector<8x128xf32>
      %c0_9 = arith.constant 0 : index
      %c0_10 = arith.constant 0 : index
      %13 = vector.load %arg3[%c0_9, %c0_10] : memref<8x128xf32, #tpu.memory_space<vmem>>, vector<8x128xf32>
      tpu.vector_store %arg3[%c0_9, %c0_10], %12 {strides = array<i32>} : memref<8x128xf32, #tpu.memory_space<vmem>>, vector<8x128xf32>,
    } else {
    }
    %c0 = arith.constant 0 : index
    %c0_1 = arith.constant 0 : index
    %3 = vector.load %arg1[%c0, %c0_1] : memref<8x128xf32, #tpu.memory_space<vmem>>, vector<8x128xf32>
    %c0_2 = arith.constant 0 : index
    %c0_3 = arith.constant 0 : index
    %4 = vector.load %arg3[%c0_2, %c0_3] : memref<8x128xf32, #tpu.memory_space<vmem>>, vector<8x128xf32>
    %5 = vector.shape_cast %3 : vector<8x128xf32> to vector<1x8x128xf32>
    %cst = arith.constant dense<0.000000e+00> : vector<8x128xf32>
    %6 = vector.multi_reduction <add>, %5, %cst [0] : vector<1x8x128xf32> to vector<8x128xf32>
    %7 = arith.addf %4, %6 : vector<8x128xf32>
    %c0_4 = arith.constant 0 : index
    %c0_5 = arith.constant 0 : index
    %8 = vector.load %arg3[%c0_4, %c0_5] : memref<8x128xf32, #tpu.memory_space<vmem>>, vector<8x128xf32>
    tpu.vector_store %arg3[%c0_4, %c0_5], %7 {strides = array<i32>} : memref<8x128xf32, #tpu.memory_space<vmem>>, vector<8x128xf32>,
    %c0_i32_6 = arith.constant 0 : i32
    %9 = arith.cmpi eq, %arg0, %c0_i32_6 : i32
    %10 = arith.extui %9 : i1 to i32
    %c0_i32_7 = arith.constant 0 : i32
    %11 = arith.cmpi ne, %10, %c0_i32_7 : i32
    scf.if %11 {
      %c0_8 = arith.constant 0 : index
      %c0_9 = arith.constant 0 : index
      %12 = vector.load %arg3[%c0_8, %c0_9] : memref<8x128xf32, #tpu.memory_space<vmem>>, vector<8x128xf32>
      %13 = vector.shape_cast %12 : vector<8x128xf32> to vector<1x8x128xf32>
      %cst_10 = arith.constant dense<0.000000e+00> : vector<1xf32>
      %14 = vector.multi_reduction <add>, %13, %cst_10 [1, 2] : vector<1x8x128xf32> to vector<1xf32>
      %15 = vector.shape_cast %14 : vector<1xf32> to vector<1x1x1xf32>
      %16 = vector.extract %15[0, 0, 0] : f32 from vector<1x1x1xf32>
      %cst_11 = arith.constant 1.562500e-02 : f32
      %17 = arith.mulf %16, %cst_11 : f32
      %18 = vector.broadcast %17 : f32 to vector<1x1xf32>
      %c0_12 = arith.constant 0 : index
      %c0_13 = arith.constant 0 : index
      %19 = vector.load %arg2[%c0_12, %c0_13] : memref<1x1xf32, #tpu.memory_space<vmem>>, vector<1x1xf32>
      tpu.vector_store %arg2[%c0_12, %c0_13], %18 {strides = array<i32>} : memref<1x1xf32, #tpu.memory_space<vmem>>, vector<1x1xf32>,
    } else {
    }
    return
  }
  func.func @transform_0(%arg0: i32) -> (i32, i32) {
    %c0_i32 = arith.constant 0 : i32
    %c0_i32_0 = arith.constant 0 : i32
    return %arg0, %c0_i32 : i32, i32
  }
  func.func @transform_1(%arg0: i32) -> (i32, i32) {
    %c0_i32 = arith.constant 0 : i32
    %c0_i32_0 = arith.constant 0 : i32
    %c0_i32_1 = arith.constant 0 : i32
    return %c0_i32, %c0_i32_0 : i32, i32
  }
}

</mosaic_0001>

<bundles_post_ra>
// kernel: tpu_custom_call.1
= control target key start
LH: loop header
LB: loop body
LE: loop exit
PB: predicated region body
PF: predicated region fallthrough
CT: control target
= control target key end

     0   :  { %6 = vsyncpa [#allocation4], 0  ;;  %s151_s0 = inlined_call_operand.hbm [shape: f32[8,128], index: 0, kind: input, shape index: {}]   ;;  %s152_s1 = inlined_call_operand.hbm [shape: f32[1,1], index: 1, kind: output, shape index: {}]  }
   0x1   :  { %7 = vsyncpa [#allocation5], 0  ;;  %s115_s6 = smov [#allocation3]   ;;  %s67_s10 = scalar_lea.hbm %s151_s0, 128 }
   0x2   :  { %s14_s7 = sshll.u32 %s115_s6, 4  ;;  %p68_p0 = scmp.ne.s32.totalorder %s151_s0, %s67_s10  ;;  %s15_s7 = int_to_ptr.vmem [resolvable:$true] %s14_s7 }
   0x3   :  { %p71_p1 = scmp.lt.u32.totalorder %s67_s10, %s151_s0 }
   0x5   :  { %p73_p2 = pnand %p71_p1, %p68_p0 }
   0x7   :  { %76 = shalt.err (!%p73_p2)
}
   0x8   :  { %s77_s15 = scalar_lea.vmem %s15_s7, 128  ;;  %p82_p4 = scmp.lt.s32.totalorder %s15_s7, %s15_s7 }
   0x9   :  { %p78_p3 = scmp.ne.s32.totalorder %s15_s7, %s77_s15  ;;  %p83_p5 = scmp.lt.s32.totalorder %s77_s15, %s77_s15 }
   0xb   :  { %p84_p6 = por %p83_p5, %p82_p4 }
   0xd   :  { %p85_p7 = pnand %p84_p6, %p78_p3 }
   0xf   :  { %88 = shalt.err (!%p85_p7)
}
  0x10   :  { %17 = dma.hbm_to_vmem [thread:$0]  %s151_s0, 128, %s15_s7, [#allocation4]  }
  0x11   :  { %111 = dma.done.wait [#allocation4], 128  }
  0x12   :  { %112 = vsyncadd [#allocation4], 4294967168  ;;  %v26_v0 = vld [vmem:[#allocation3] sm:$0xff]  ;;  %s116_s18 = smov [#allocation6]   ;;  %vm46_vm0 = vcmask 0  }
  0x13   :  { %35 = vadd.xlane.f32.xlu0 %v26_v0  ;;  %s54_s19 = sshll.u32 %s116_s18, 4  ;;  %s55_s19 = int_to_ptr.vmem [resolvable:$true] %s54_s19 }
  0x14   :  { %s89_s0 = scalar_lea.vmem %s55_s19, 16  ;;  %s93_s22 = scalar_lea.vmem %s55_s19, 32 }
  0x15   :  { %p90_p8 = scmp.ne.s32.totalorder %s55_s19, %s89_s0  ;;  %p94_p9 = scmp.lt.s32.totalorder %s55_s19, %s55_s19 }
  0x16   :  { %p95_p10 = scmp.lt.s32.totalorder %s93_s22, %s89_s0 }
  0x18   :  { %p96_p11 = por %p95_p10, %p94_p9 }
  0x1a   :  { %p97_p12 = pnand %p96_p11, %p90_p8 }
  0xa0   :  { %v36_v1 = vpop.xlane.xlu0 %35 }
  0xa1   :  { %v37_v2 = vrot.slane %v36_v1, 4 }
  0xa3   :  { %v38_v3 = vadd.f32 %v37_v2, %v36_v1 }
  0xa5   :  { %v39_v4 = vrot.slane %v38_v3, 2 }
  0xa7   :  { %v40_v5 = vadd.f32 %v39_v4, %v38_v3 }
  0xa9   :  { %v41_v6 = vrot.slane %v40_v5, 1 }
  0xab   :  { %v42_v7 = vadd.f32 %v41_v6, %v40_v5 }
  0xad   :  { %63 = vpush %v42_v7 }
  0xde   :  { %s64_s20 = spop %63 }
  0xdf   :  { %s44_s21 = smul.f32 0.015625, %s64_s20 }
  0xe1   :  { %v45_v8 = vstv %s44_s21 }
  0xe2   :  { %47 = vst.msk [vmem:[#allocation6] sm:$0x1] %vm46_vm0, %v45_v8 }
  0xe3   :  { %100 = shalt.err (!%p97_p12)
}
  0xe4   :  { %s101_s25 = scalar_lea.hbm %s152_s1, 16 }
  0xe5   :  { %p102_p13 = scmp.ne.s32.totalorder %s152_s1, %s101_s25  ;;  %p105_p0 = scmp.lt.u32.totalorder %s101_s25, %s152_s1 }
  0xe7   :  { %p107_p1 = pnand %p105_p0, %p102_p13 }
  0xe9   :  { %110 = shalt.err (!%p107_p1)
}
  0xea   :  { %57 = dma.vmem_to_hbm [thread:$0]  %s55_s19, 16, %s152_s1, [#allocation5]  }
  0xeb   :  { %113 = dma.done.wait [#allocation5], 16  }
  0xec   :  { %114 = vsyncadd [#allocation5], 4294967280 }
  0xed   :  { %61 = vsyncpa [#allocation4], 1 }
  0xee   :  { %62 = vsyncpa [#allocation5], 1 }

</bundles_post_ra>
